<compile_context>
chip_gen: v7x
topology: tpu7x:2x2x1
jax: 0.10.0
libtpu: 0.0.40
codegen_flags: <defaults>
</compile_context>

<pallas_src>
import functools

import jax
import jax.numpy as jnp
from jax import lax
from jax.experimental import pallas as pl
from jax.experimental.pallas import tpu as pltpu


# ---------------------------------------------------------------------------
# Kernel: one (batch, N-tile) grid step runs the whole block stack on a
# channel-major (C, TILE_N) activation slab kept in VMEM/vregs.
# Weights/biases are whole-array VMEM-resident refs (single copy).
# ---------------------------------------------------------------------------
def _pos_extraction_kernel(x_ref, w1_ref, b1_ref, w2_ref, b2_ref, out_ref, *,
                           unroll):
    f32 = jnp.float32
    mm_dtype = w1_ref.dtype                     # bf16 matmul operands
    n_blocks = w1_ref.shape[0]
    y0 = x_ref[0].astype(f32)                   # (C, TN), N rides the lanes

    def block(blk, y):
        # net1: Conv1d(1x1) + folded BN + ReLU          -> (Cmid, TN)
        h = jnp.dot(w1_ref[blk], y.astype(mm_dtype), preferred_element_type=f32)
        h = jnp.maximum(h + b1_ref[blk], 0.0)
        # net2: Conv1d(1x1) + folded BN                 -> (C, TN)
        z = jnp.dot(w2_ref[blk], h.astype(mm_dtype), preferred_element_type=f32)
        z = z + b2_ref[blk]
        # residual + activation (f32 elementwise path)
        return jnp.maximum(z + y, 0.0)

    if unroll:                                  # small stacks: static unroll
        y = y0
        for blk in range(n_blocks):
            y = block(blk, y)
    else:                                       # deep/wide stacks: bounded live set
        y = lax.fori_loop(0, n_blocks, block, y0)

    out_ref[0] = y.astype(out_ref.dtype)        # lane-dense store


# ---------------------------------------------------------------------------
# VMEM accounting / tile selection (generation aware)
# ---------------------------------------------------------------------------
def _ceil_to(v, m):
    return -(-v // m) * m


def _vmem_capacity_bytes():
    try:
        cap = getattr(pltpu.get_tpu_info(), "vmem_capacity_bytes", None)
        if cap:
            return int(cap)
    except Exception:
        pass
    return 64 << 20  # conservative fallback (v7x per-TC)


def _vmem_bytes(C, c_mid, nb, tn, act_itemsize):
    lane = 128
    tn_p = _ceil_to(tn, lane)
    # activation tiles: input + output, each double-buffered by the pipeline
    act_tile = _ceil_to(C, 8) * tn_p * act_itemsize
    acts = 2 * 2 * act_tile
    # bf16 weights, single copy (whole-array VMEM refs, no double-buffer)
    w1 = nb * _ceil_to(c_mid, 16) * _ceil_to(C, lane) * 2
    w2 = nb * _ceil_to(C, 16) * _ceil_to(c_mid, lane) * 2
    # f32 biases, lane-padded 1 -> 128, single copy
    b = nb * (_ceil_to(c_mid, 8) + _ceil_to(C, 8)) * lane * 4
    # live f32 temporaries (y, h, z) + bf16 casts feeding the MXU
    temps = (2 * _ceil_to(C, 8) + _ceil_to(c_mid, 8)) * tn_p * 4
    temps += (_ceil_to(C, 16) + _ceil_to(c_mid, 16)) * tn_p * 2
    return acts + w1 + w2 + b + temps


def _pick_tile_n(N, B, C, c_mid, nb, act_itemsize, vmem_cap):
    budget = int(0.55 * vmem_cap)
    cands = [t for t in (2048, 1024, 512, 256, 128) if t <= N and N % t == 0]
    if not cands:
        return N  # small / ragged N: single full-extent tile (masked stores)
    fitting = [t for t in cands
               if _vmem_bytes(C, c_mid, nb, t, act_itemsize) <= budget]
    if not fitting:
        fitting = [cands[-1]]
    # Megacore balance (v7x has 2 TCs sharing the parallel axes): prefer an
    # even (>=2) total number of grid steps.
    for t in fitting:
        steps = B * (N // t)
        if steps >= 2 and steps % 2 == 0:
            return t
    return fitting[0]


# ---------------------------------------------------------------------------
# Wrapper
# ---------------------------------------------------------------------------
def pos_extraction(x, params, *, tile_n=None):
    """x: [B, C, N] (PyTorch NCL layout) -> [B, C, N]."""
    B, C, N = x.shape
    w1, b1, w2, b2 = params["w1"], params["b1"], params["w2"], params["b2"]
    nb, c_mid, _ = w1.shape

    vmem_cap = _vmem_capacity_bytes()
    tn = tile_n or _pick_tile_n(N, B, C, c_mid, nb, x.dtype.itemsize, vmem_cap)
    grid = (B, pl.cdiv(N, tn))

    est = _vmem_bytes(C, c_mid, nb, tn, x.dtype.itemsize)
    vmem_limit = int(min(vmem_cap - (2 << 20),
                         max(32 << 20, est + est // 2 + (4 << 20))))

    act_spec = pl.BlockSpec((1, C, tn), lambda b, n: (b, 0, n))
    # Constants: whole array resident in VMEM, single copy, no pipelining.
    const_spec = pl.BlockSpec(memory_space=pltpu.MemorySpace.VMEM)

    kernel = functools.partial(
        _pos_extraction_kernel,
        unroll=(nb < 4 or C < 256),
    )

    return pl.pallas_call(
        kernel,
        out_shape=jax.ShapeDtypeStruct((B, C, N), x.dtype),
        grid=grid,
        in_specs=[
            act_spec,       # x tile, channel-major
            const_spec,     # folded net1 weights (bf16)
            const_spec,     # folded net1 biases  (f32)
            const_spec,     # folded net2 weights (bf16)
            const_spec,     # folded net2 biases  (f32)
        ],
        out_specs=act_spec,
        compiler_params=pltpu.CompilerParams(
            dimension_semantics=("parallel", "parallel"),
            vmem_limit_bytes=vmem_limit,
        ),
    )(x, w1, b1, w2, b2)


# ---------------------------------------------------------------------------
# Parameter construction (Conv1d k=1 + eval-mode BN folding)
# ---------------------------------------------------------------------------
def _fold_conv_bn(w_conv, b_conv, gamma, beta, mean, var, eps=1e-5):
    """Fold Conv1d(k=1) weight (Cout, Cin) + bias (Cout,) with eval-mode BN into
    channel-major y = W' @ x + b'.  Weights go to bf16 (MXU operands), biases
    stay f32 (added on the f32 elementwise path)."""
    scale = gamma / jnp.sqrt(var + eps)
    w = w_conv * scale[:, None]             # (Cout, Cin)
    b = (b_conv - mean) * scale + beta      # (Cout,)
    return w.astype(jnp.bfloat16), b.astype(jnp.float32)


def make_params(key, channels, blocks=1, res_expansion=1.0):
    """Deterministic synthetic parameters for a PosExtraction stack."""
    f32 = jnp.float32
    c_mid = int(channels * res_expansion)
    w1s, b1s, w2s, b2s = [], [], [], []
    for kb in jax.random.split(key, blocks):
        k = jax.random.split(kb, 8)
        # net1: Conv1d(channels -> c_mid) + BN + ReLU
        wc1 = 0.1 * jax.random.normal(k[0], (c_mid, channels), f32)
        bc1 = 0.1 * jax.random.normal(k[1], (c_mid,), f32)
        g1 = 1.0 + 0.1 * jax.random.normal(k[2], (c_mid,), f32)
        be1 = 0.1 * jax.random.normal(k[3], (c_mid,), f32)
        w1, b1 = _fold_conv_bn(wc1, bc1, g1, be1,
                               jnp.zeros((c_mid,), f32), jnp.ones((c_mid,), f32))
        # net2: Conv1d(c_mid -> channels) + BN
        wc2 = 0.1 * jax.random.normal(k[4], (channels, c_mid), f32)
        bc2 = 0.1 * jax.random.normal(k[5], (channels,), f32)
        g2 = 1.0 + 0.1 * jax.random.normal(k[6], (channels,), f32)
        be2 = 0.1 * jax.random.normal(k[7], (channels,), f32)
        w2, b2 = _fold_conv_bn(wc2, bc2, g2, be2,
                               jnp.zeros((channels,), f32), jnp.ones((channels,), f32))
        w1s.append(w1); b1s.append(b1[:, None])
        w2s.append(w2); b2s.append(b2[:, None])
    return {"w1": jnp.stack(w1s), "b1": jnp.stack(b1s),
            "w2": jnp.stack(w2s), "b2": jnp.stack(b2s)}


# ---------------------------------------------------------------------------
# Pure-JAX reference (eval-mode semantics of the PyTorch forward, f32 math)
# ---------------------------------------------------------------------------
def pos_extraction_ref(x, params):
    y = x.astype(jnp.float32)
    w1, b1, w2, b2 = params["w1"], params["b1"], params["w2"], params["b2"]
    for blk in range(w1.shape[0]):
        wa = w1[blk].astype(jnp.float32)
        wb = w2[blk].astype(jnp.float32)
        h = jnp.maximum(jnp.einsum("oc,bcn->bon", wa, y) + b1[blk][None], 0.0)
        z = jnp.einsum("oc,bcn->bon", wb, h) + b2[blk][None]
        y = jnp.maximum(z + y, 0.0)
    return y.astype(x.dtype)


if __name__ == "__main__":
    B, C, N = 2, 32, 256          # input[b, d, g] per the module docstring
    blocks = 2

    key = jax.random.PRNGKey(0)
    kx, kp = jax.random.split(key)
    x = jax.random.normal(kx, (B, C, N), jnp.float32)
    params = make_params(kp, C, blocks=blocks, res_expansion=1.0)

    out = pos_extraction(x, params)
    jax.block_until_ready(out)

    assert out.shape == (B, C, N), out.shape
    assert bool(jnp.all(jnp.isfinite(out)))
    ref = pos_extraction_ref(x, params)
    err = float(jnp.max(jnp.abs(out - ref)))
    # bf16 MXU operands vs f32 reference: loosened tolerance.
    assert err < 5e-2, err
    print("KERNEL_OK")
</pallas_src>

<mosaic_0001>
module attributes {stable_mosaic.version = 11 : i64} {
  func.func @_pos_extraction_kernel(%arg0: i32, %arg1: i32, %arg2: memref<1x32x256xf32, #tpu.memory_space<vmem>>, %arg3: memref<2x32x32xbf16, #tpu.memory_space<vmem>>, %arg4: memref<2x32x1xf32, #tpu.memory_space<vmem>>, %arg5: memref<2x32x32xbf16, #tpu.memory_space<vmem>>, %arg6: memref<2x32x1xf32, #tpu.memory_space<vmem>>, %arg7: memref<1x32x256xf32, #tpu.memory_space<vmem>>) attributes {dimension_semantics = [#tpu.dimension_semantics<parallel>, #tpu.dimension_semantics<parallel>], iteration_bounds = array<i64: 2, 1>, scalar_prefetch = 0 : i64, scratch_operands = 0 : i64, tpu.core_type = #tpu.core_type<tc>, window_params = [{transform_indices = @transform_0, window_bounds = array<i64: 1, 32, 256>}, {pipeline_mode = #tpu.pipeline_mode<synchronous>, transform_indices = @transform_1, window_bounds = array<i64: 2, 32, 32>}, {pipeline_mode = #tpu.pipeline_mode<synchronous>, transform_indices = @transform_2, window_bounds = array<i64: 2, 32, 1>}, {pipeline_mode = #tpu.pipeline_mode<synchronous>, transform_indices = @transform_3, window_bounds = array<i64: 2, 32, 32>}, {pipeline_mode = #tpu.pipeline_mode<synchronous>, transform_indices = @transform_4, window_bounds = array<i64: 2, 32, 1>}, {transform_indices = @transform_5, window_bounds = array<i64: 1, 32, 256>}]} {
    %c0 = arith.constant 0 : index
    %c0_0 = arith.constant 0 : index
    %c0_1 = arith.constant 0 : index
    %0 = vector.load %arg2[%c0, %c0_0, %c0_1] : memref<1x32x256xf32, #tpu.memory_space<vmem>>, vector<1x32x256xf32>
    %1 = vector.shape_cast %0 : vector<1x32x256xf32> to vector<32x256xf32>
    %c0_2 = arith.constant 0 : index
    %c0_3 = arith.constant 0 : index
    %c0_4 = arith.constant 0 : index
    %2 = vector.load %arg3[%c0_2, %c0_3, %c0_4] : memref<2x32x32xbf16, #tpu.memory_space<vmem>>, vector<1x32x32xbf16>
    %3 = vector.shape_cast %2 : vector<1x32x32xbf16> to vector<32x32xbf16>
    %4 = arith.truncf %1 : vector<32x256xf32> to vector<32x256xbf16>
    %cst = arith.constant dense<0.000000e+00> : vector<32x256xf32>
    %5 = tpu.matmul %3, %4, %cst {dimension_numbers = #tpu.dot_dimension_numbers<[1], [0], [0], [1], [0, 0, 1, 1], [], []>} : vector<32x32xbf16>, vector<32x256xbf16>, vector<32x256xf32> -> vector<32x256xf32>
    %c0_5 = arith.constant 0 : index
    %c0_6 = arith.constant 0 : index
    %c0_7 = arith.constant 0 : index
    %6 = vector.load %arg4[%c0_5, %c0_6, %c0_7] : memref<2x32x1xf32, #tpu.memory_space<vmem>>, vector<1x32x1xf32>
    %7 = vector.shape_cast %6 : vector<1x32x1xf32> to vector<32x1xf32>
    %8 = vector.broadcast %7 : vector<32x1xf32> to vector<32x256xf32>
    %9 = arith.addf %5, %8 : vector<32x256xf32>
    %cst_8 = arith.constant 0.000000e+00 : f32
    %10 = vector.broadcast %cst_8 : f32 to vector<32x256xf32>
    %11 = arith.maximumf %9, %10 : vector<32x256xf32>
    %c0_9 = arith.constant 0 : index
    %c0_10 = arith.constant 0 : index
    %c0_11 = arith.constant 0 : index
    %12 = vector.load %arg5[%c0_9, %c0_10, %c0_11] : memref<2x32x32xbf16, #tpu.memory_space<vmem>>, vector<1x32x32xbf16>
    %13 = vector.shape_cast %12 : vector<1x32x32xbf16> to vector<32x32xbf16>
    %14 = arith.truncf %11 : vector<32x256xf32> to vector<32x256xbf16>
    %cst_12 = arith.constant dense<0.000000e+00> : vector<32x256xf32>
    %15 = tpu.matmul %13, %14, %cst_12 {dimension_numbers = #tpu.dot_dimension_numbers<[1], [0], [0], [1], [0, 0, 1, 1], [], []>} : vector<32x32xbf16>, vector<32x256xbf16>, vector<32x256xf32> -> vector<32x256xf32>
    %c0_13 = arith.constant 0 : index
    %c0_14 = arith.constant 0 : index
    %c0_15 = arith.constant 0 : index
    %16 = vector.load %arg6[%c0_13, %c0_14, %c0_15] : memref<2x32x1xf32, #tpu.memory_space<vmem>>, vector<1x32x1xf32>
    %17 = vector.shape_cast %16 : vector<1x32x1xf32> to vector<32x1xf32>
    %18 = vector.broadcast %17 : vector<32x1xf32> to vector<32x256xf32>
    %19 = arith.addf %15, %18 : vector<32x256xf32>
    %20 = arith.addf %19, %1 : vector<32x256xf32>
    %cst_16 = arith.constant 0.000000e+00 : f32
    %21 = vector.broadcast %cst_16 : f32 to vector<32x256xf32>
    %22 = arith.maximumf %20, %21 : vector<32x256xf32>
    %c1 = arith.constant 1 : index
    %c0_17 = arith.constant 0 : index
    %c0_18 = arith.constant 0 : index
    %23 = vector.load %arg3[%c1, %c0_17, %c0_18] : memref<2x32x32xbf16, #tpu.memory_space<vmem>>, vector<1x32x32xbf16>
    %24 = vector.shape_cast %23 : vector<1x32x32xbf16> to vector<32x32xbf16>
    %25 = arith.truncf %22 : vector<32x256xf32> to vector<32x256xbf16>
    %cst_19 = arith.constant dense<0.000000e+00> : vector<32x256xf32>
    %26 = tpu.matmul %24, %25, %cst_19 {dimension_numbers = #tpu.dot_dimension_numbers<[1], [0], [0], [1], [0, 0, 1, 1], [], []>} : vector<32x32xbf16>, vector<32x256xbf16>, vector<32x256xf32> -> vector<32x256xf32>
    %c1_20 = arith.constant 1 : index
    %c0_21 = arith.constant 0 : index
    %c0_22 = arith.constant 0 : index
    %27 = vector.load %arg4[%c1_20, %c0_21, %c0_22] : memref<2x32x1xf32, #tpu.memory_space<vmem>>, vector<1x32x1xf32>
    %28 = vector.shape_cast %27 : vector<1x32x1xf32> to vector<32x1xf32>
    %29 = vector.broadcast %28 : vector<32x1xf32> to vector<32x256xf32>
    %30 = arith.addf %26, %29 : vector<32x256xf32>
    %cst_23 = arith.constant 0.000000e+00 : f32
    %31 = vector.broadcast %cst_23 : f32 to vector<32x256xf32>
    %32 = arith.maximumf %30, %31 : vector<32x256xf32>
    %c1_24 = arith.constant 1 : index
    %c0_25 = arith.constant 0 : index
    %c0_26 = arith.constant 0 : index
    %33 = vector.load %arg5[%c1_24, %c0_25, %c0_26] : memref<2x32x32xbf16, #tpu.memory_space<vmem>>, vector<1x32x32xbf16>
    %34 = vector.shape_cast %33 : vector<1x32x32xbf16> to vector<32x32xbf16>
    %35 = arith.truncf %32 : vector<32x256xf32> to vector<32x256xbf16>
    %cst_27 = arith.constant dense<0.000000e+00> : vector<32x256xf32>
    %36 = tpu.matmul %34, %35, %cst_27 {dimension_numbers = #tpu.dot_dimension_numbers<[1], [0], [0], [1], [0, 0, 1, 1], [], []>} : vector<32x32xbf16>, vector<32x256xbf16>, vector<32x256xf32> -> vector<32x256xf32>
    %c1_28 = arith.constant 1 : index
    %c0_29 = arith.constant 0 : index
    %c0_30 = arith.constant 0 : index
    %37 = vector.load %arg6[%c1_28, %c0_29, %c0_30] : memref<2x32x1xf32, #tpu.memory_space<vmem>>, vector<1x32x1xf32>
    %38 = vector.shape_cast %37 : vector<1x32x1xf32> to vector<32x1xf32>
    %39 = vector.broadcast %38 : vector<32x1xf32> to vector<32x256xf32>
    %40 = arith.addf %36, %39 : vector<32x256xf32>
    %41 = arith.addf %40, %22 : vector<32x256xf32>
    %cst_31 = arith.constant 0.000000e+00 : f32
    %42 = vector.broadcast %cst_31 : f32 to vector<32x256xf32>
    %43 = arith.maximumf %41, %42 : vector<32x256xf32>
    %c0_32 = arith.constant 0 : index
    %c0_33 = arith.constant 0 : index
    %c0_34 = arith.constant 0 : index
    %44 = vector.load %arg7[%c0_32, %c0_33, %c0_34] : memref<1x32x256xf32, #tpu.memory_space<vmem>>, vector<1x32x256xf32>
    %45 = vector.shape_cast %44 : vector<1x32x256xf32> to vector<32x256xf32>
    %46 = vector.shape_cast %43 : vector<32x256xf32> to vector<1x32x256xf32>
    tpu.vector_store %arg7[%c0_32, %c0_33, %c0_34], %46 {strides = array<i32>} : memref<1x32x256xf32, #tpu.memory_space<vmem>>, vector<1x32x256xf32>,
    return
  }
  func.func @transform_0(%arg0: i32, %arg1: i32) -> (i32, i32, i32) {
    %c0_i32 = arith.constant 0 : i32
    %c0_i32_0 = arith.constant 0 : i32
    return %arg0, %c0_i32, %arg1 : i32, i32, i32
  }
  func.func @transform_1(%arg0: i32, %arg1: i32) -> (i32, i32, i32) {
    %c0_i32 = arith.constant 0 : i32
    %c0_i32_0 = arith.constant 0 : i32
    %c0_i32_1 = arith.constant 0 : i32
    %c0_i32_2 = arith.constant 0 : i32
    return %c0_i32, %c0_i32_0, %c0_i32_1 : i32, i32, i32
  }
  func.func @transform_2(%arg0: i32, %arg1: i32) -> (i32, i32, i32) {
    %c0_i32 = arith.constant 0 : i32
    %c0_i32_0 = arith.constant 0 : i32
    %c0_i32_1 = arith.constant 0 : i32
    %c0_i32_2 = arith.constant 0 : i32
    return %c0_i32, %c0_i32_0, %c0_i32_1 : i32, i32, i32
  }
  func.func @transform_3(%arg0: i32, %arg1: i32) -> (i32, i32, i32) {
    %c0_i32 = arith.constant 0 : i32
    %c0_i32_0 = arith.constant 0 : i32
    %c0_i32_1 = arith.constant 0 : i32
    %c0_i32_2 = arith.constant 0 : i32
    return %c0_i32, %c0_i32_0, %c0_i32_1 : i32, i32, i32
  }
  func.func @transform_4(%arg0: i32, %arg1: i32) -> (i32, i32, i32) {
    %c0_i32 = arith.constant 0 : i32
    %c0_i32_0 = arith.constant 0 : i32
    %c0_i32_1 = arith.constant 0 : i32
    %c0_i32_2 = arith.constant 0 : i32
    return %c0_i32, %c0_i32_0, %c0_i32_1 : i32, i32, i32
  }
  func.func @transform_5(%arg0: i32, %arg1: i32) -> (i32, i32, i32) {
    %c0_i32 = arith.constant 0 : i32
    %c0_i32_0 = arith.constant 0 : i32
    return %arg0, %c0_i32, %arg1 : i32, i32, i32
  }
}

</mosaic_0001>

<bundles_post_ra>
// kernel: tpu_custom_call.1
= control target key start
LH: loop header
LB: loop body
LE: loop exit
PB: predicated region body
PF: predicated region fallthrough
CT: control target
= control target key end

     0   :  { %10 = vsyncpa [#allocation3], 0  ;;  %s1550_s0 = inlined_call_operand.vmem [shape: f32[2,32,256], index: 0, kind: input, shape index: {}]   ;;  %s1551_s1 = inlined_call_operand.hbm [shape: bf16[2,32,32], index: 1, kind: input, shape index: {}]   ;;  %s1552_s2 = inlined_call_operand.vmem [shape: f32[2,32,1], index: 2, kind: input, shape index: {}]   ;;  %s1553_s3 = inlined_call_operand.hbm [shape: bf16[2,32,32], index: 3, kind: input, shape index: {}]   ;;  %s1554_s4 = inlined_call_operand.vmem [shape: f32[2,32,1], index: 4, kind: input, shape index: {}]   ;;  %s1555_s5 = inlined_call_operand.hbm [shape: f32[2,32,256], index: 5, kind: output, shape index: {}]  }
   0x1   :  { %11 = vsyncpa [#allocation6], 0 }
   0x2   :  { %12 = vsyncpa [#allocation4], 0 }
   0x3   :  { %14 = vsyncpa [#allocation4 + $0x1], 0  ;;  %s1191_s18 = smov 0   ;;  %s1193_s19 = smov 0  }
   0x4   :  { %s1195_s20 = smov 0   ;;  %s1197_s21 = smov 0  }
   0x5   :  { %s1199_s22 = smov 0   ;;  %s1201_s23 = smov 0  }
   0x6 LB: > { %s875_s24 = sadd.s32 4294967295, %s1151_s23   ;;  %s876_s25 = sadd.s32 4294967294, %s1151_s23   ;;  %s1151_s23 = sphi %s1201_s23, %s20_s23   ;;  %s1147_s22 = sphi %s1199_s22, %s1576_s22   ;;  %s1143_s21 = sphi %s1197_s21, %s1575_s21   ;;  %s1139_s20 = sphi %s1195_s20, %s1574_s20   ;;  %s1135_s19 = sphi %s1193_s19, %s1573_s19   ;;  %s1131_s18 = sphi %s1191_s18, %s1572_s18  }
   0x7   : > { %s32_s26 = sadd.s32 1, %s1147_s22  ;;  %s153_s27 = sadd.s32 1, %s1139_s20 }
   0x8   : > { %p34_p0 = scmp.ge.s32.totalorder %s32_s26, 2  ;;  %p163_p1 = scmp.ne.s32.totalorder %s1139_s20, %s1135_s19 }
   0x9   : > { %p164_p2 = scmp.eq.s32.totalorder %s875_s24, 1  ;;  %p169_p3 = scmp.ne.s32.totalorder %s1135_s19, %s1131_s18 }
   0xa   : > { %s1578_s26 = smov (%p34_p0, %s32_s26), 0  ;;  %p170_p5 = scmp.eq.s32.totalorder %s876_s25, 1 }
   0xb   : > { %1561 = sst [smem:[#allocation11_spill]] %s1578_s26  ;;  %p1231_p4 = por %p164_p2, %p163_p1 }
   0xc   : > { %s148_s29 = ssub.s32 %s1147_s22, %s1578_s26  ;;  %p877_p6 = scmp.ge.s32.totalorder %s1151_s23, 1 }
   0xd   : > { %s1562_s28 = scalar_select %p1231_p4, 1, 0 }
   0xe   : > { %p151_p7 = scmp.eq.s32.totalorder %s148_s29, 0  ;;  %p1238_p8 = por %p170_p5, %p169_p3 }
   0xf   : > { %p177_p9 = scmp.lt.s32.totalorder %s1151_s23, 3  ;;  %p1250_p11 = scmp.eq.s32.totalorder %s875_s24, 0 }
  0x10   : > { %s1563_s30 = scalar_select %p1238_p8, 1, 0 }
  0x11   : > { %s1244_s6 = scalar_select %p151_p7, %s1139_s20, %s153_s27  }
  0x12   : > { %p1246_p10 = pnand %p877_p6, %p177_p9  ;;  %s1153_s9 = smov [#allocation2]  }
  0x13   : > { %s1565_s8 = scalar_select %p1250_p11, 1, 0 }
  0x14   : > { %s1564_s7 = scalar_select %p1246_p10, 1, 0 }
  0x15   : > { %p928_p12 = pneg %p1246_p10  ;;  %s189_s10 = sshll.u32 %s1153_s9, 4  ;;  %s190_s10 = int_to_ptr.vmem [resolvable:$true] %s189_s10 }
  0x16   : > { %s1154_s12 = smov [#allocation5]   ;;  %s1009_s16 = scalar_lea.hbm %s1551_s1, 512 }
  0x17   : > { %p1258_p13 = pnand %p1250_p11, %p928_p12  ;;  %s205_s13 = sshll.u32 %s1154_s12, 4  ;;  %s1262_s13 = int_to_ptr.vmem [resolvable:$true] %s205_s13 }
  0x18   : > { %p1010_p0 = scmp.ne.s32.totalorder %s1551_s1, %s1009_s16  ;;  %p1016_p5 = scmp.lt.u32.totalorder %s1009_s16, %s1551_s1 }
  0x19   : > { %p1011_p1 = pneg %p1258_p13 }
  0x1b   : > { %p1012_p2 = pnand %p1011_p1, %p1010_p0 }
  0x1d   : > { %p1013_p3 = pneg %p1012_p2 }
  0x1f   : > { %p1018_p6 = pnand %p1016_p5, %p1013_p3 }
  0x21   : > { %1021 = shalt.err (!%p1018_p6)
}
  0x22   : > { %s1022_s29 = scalar_lea.vmem %s190_s10, 512  ;;  %p1030_p8 = scmp.lt.s32.totalorder %s190_s10, %s190_s10 }
  0x23   : > { %p1023_p7 = scmp.ne.s32.totalorder %s190_s10, %s1022_s29  ;;  %p1031_p4 = scmp.lt.s32.totalorder %s1022_s29, %s1022_s29 }
  0x25   : > { %p1025_p9 = pnand %p1023_p7, %p1011_p1  ;;  %p1032_p11 = por %p1031_p4, %p1030_p8 }
  0x27   : > { %p1026_p12 = pneg %p1025_p9 }
  0x29   : > { %p1033_p10 = pnand %p1032_p11, %p1026_p12 }
  0x2b   : > { %1036 = shalt.err (!%p1033_p10)
}
  0x2c   : > { %s1155_s9 = smov 64   ;;  %s1156_s12 = smov 4  }
  0x2d   : > { %931 = dma.hbm_to_vmem [thread:$0]  (!%p1258_p13), %s1551_s1, 512, %s190_s10, [#allocation3], %s1155_s9, %s1155_s9, %s1156_s12  }
  0x2e   : > { %s1037_s24 = scalar_lea.hbm %s1553_s3, 512 }
  0x2f   : > { %p1038_p0 = scmp.ne.s32.totalorder %s1553_s3, %s1037_s24  ;;  %p1044_p10 = scmp.lt.u32.totalorder %s1037_s24, %s1553_s3 }
  0x31   : > { %p1040_p4 = pnand %p1038_p0, %p1011_p1 }
  0x33   : > { %p1041_p8 = pneg %p1040_p4 }
  0x35   : > { %p1046_p11 = pnand %p1044_p10, %p1041_p8 }
  0x37   : > { %1049 = shalt.err (!%p1046_p11)
}
  0x38   : > { %s1050_s10 = scalar_lea.vmem %s1262_s13, 512  ;;  %p1058_p6 = scmp.lt.s32.totalorder %s1262_s13, %s1262_s13 }
  0x39   : > { %p1051_p2 = scmp.ne.s32.totalorder %s1262_s13, %s1050_s10  ;;  %p1059_p7 = scmp.lt.s32.totalorder %s1050_s10, %s1050_s10 }
  0x3b   : > { %p1053_p3 = pnand %p1051_p2, %p1011_p1  ;;  %p1060_p9 = por %p1059_p7, %p1058_p6 }
  0x3d   : > { %p1054_p5 = pneg %p1053_p3 }
  0x3f   : > { %p1061_p12 = pnand %p1060_p9, %p1054_p5 }
  0x41   : > { %1064 = shalt.err (!%p1061_p12)
}
  0x42   : > { %934 = dma.hbm_to_vmem [thread:$0]  (!%p1258_p13), %s1553_s3, 512, %s1262_s13, [#allocation6], %s1155_s9, %s1155_s9, %s1156_s12  }
  0x43   : > { %p1567_p0 = scmp.ne.s32.totalorder %s1564_s7, 0 }
  0x44   : > { %p1568_p4 = scmp.ne.s32.totalorder (!%p1567_p0), %s1565_s8, 0 }
  0x45   : > { %237 = sbr.rel (%p1567_p0) target bundleno = 1041 (0x411), region = 40 }
  0x4c   : > { %1118 = dma.done.wait (%p1568_p4), [#allocation3], 512  }
  0x4d   : > { %1120 = vsyncadd (%p1568_p4), [#allocation3], 4294966784 }
  0x4e   : > { %1122 = dma.done.wait (%p1568_p4), [#allocation6], 512  }
  0x4f   : > { %1124 = vsyncadd (%p1568_p4), [#allocation6], 4294966784  ;;  %p274_p1 = scmp.lt.s32.totalorder %s1143_s21, 1  ;;  %v1157_v0 = vmov 0   ;;  %v301_v13 = vld [vmem:[%s1552_s2] sm:$0xff]  ;;  %v303_v14 = vld [vmem:[%s1552_s2 + $0x10] sm:$0xff] }
  0x50   : > { %374 = vmatprep.mubr.bf16.mxu0 %v1157_v0  ;;  %999 = vset.pattern.permute.xlu0 %v1157_v0  ;;  %v302_v15 = vld [vmem:[%s1552_s2 + $0x8] sm:$0xff]  ;;  %v1001_v16 = vld [vmem:[#allocation2] sm:$0xff]   ;;  %v304_v17 = vld [vmem:[%s1552_s2 + $0x18] sm:$0xff]  ;;  %vm335_vm0 = vcmask 261120   ;;  %s270_s8 = sand.u32 1, %s1135_s19   ;;  %s917_s24 = sshll.u32 %s1143_s21, 10 }
  0x51   : > { %s275_s7 = scalar_select %p274_p1, %s1143_s21, 1  ;;  %1000 = vset.pattern.permute.xlu1 %v1157_v0  ;;  %483 = vmatprep.mubr.bf16.mxu1 %v1157_v0  ;;  %v411_v18 = vld [vmem:[%s1554_s4] sm:$0xff]  ;;  %v412_v19 = vld [vmem:[%s1554_s4 + $0x8] sm:$0xff]  ;;  %v413_v20 = vld [vmem:[%s1554_s4 + $0x10] sm:$0xff] }
  0x52   : > { %307 = vperm.xlu0 %999, %v301_v13   ;;  %317 = vperm.xlu1 %1000, %v303_v14   ;;  %v1002_v21 = vld [vmem:[#allocation2 + $0x8] sm:$0xff]   ;;  %v414_v22 = vld [vmem:[%s1554_s4 + $0x18] sm:$0xff]  ;;  %v895_v23 = vld [vmem:[%s1552_s2 + $0x20] sm:$0xff]  ;;  %s884_s15 = sshll.u32 %s270_s8, 6  ;;  %s1497_s21 = scalar_lea.hbm %s1555_s5, %s917_s24 }
  0x53   : > { %s916_s11 = sshll.u32 %s275_s7, 6  ;;  %v896_v24 = vld [vmem:[%s1552_s2 + $0x28] sm:$0xff]  ;;  %v897_v25 = vld [vmem:[%s1552_s2 + $0x30] sm:$0xff]  ;;  %v898_v26 = vld [vmem:[%s1552_s2 + $0x38] sm:$0xff]  ;;  %s1475_s16 = scalar_lea.vmem [#allocation7], %s884_s15 }
  0x54   : > { %s281_s12 = scalar_lea.vmem %s1550_s0, %s916_s11  ;;  %v903_v27 = vld [vmem:[%s1554_s4 + $0x20] sm:$0xff]  ;;  %v904_v28 = vld [vmem:[%s1554_s4 + $0x28] sm:$0xff]  ;;  %v905_v29 = vld [vmem:[%s1554_s4 + $0x30] sm:$0xff]  ;;  %s774_s17 = sshll.u32 %s1475_s16, 4  ;;  %s1491_s17 = int_to_ptr.vmem [resolvable:$true] %s774_s17 }
  0x55   : > { %v1330_v1 = vld [vmem:[%s281_s12 + $0x8] sm:$0xff]  ;;  %v1332_v2 = vld [vmem:[%s281_s12 + $0x18] sm:$0xff]  ;;  %v1334_v3 = vld [vmem:[%s281_s12] sm:$0xff]  ;;  %s1504_s29 = scalar_lea.sflag [#allocation4], %s270_s8  ;;  %s1065_s10 = scalar_lea.vmem %s1491_s17, 1024 }
  0x56   : > { %v298_v4 = vpack.c.bf16 %v1332_v2, %v1330_v1  ;;  %v1338_v5 = vld [vmem:[%s281_s12 + $0x10] sm:$0xff]  ;;  %v1340_v6 = vld [vmem:[%s281_s12 + $0x28] sm:$0xff]  ;;  %v1342_v7 = vld [vmem:[%s281_s12 + $0x38] sm:$0xff]  ;;  %312 = vperm.xlu0 %999, %v302_v15   ;;  %322 = vperm.xlu1 %1000, %v304_v17   ;;  %p1066_p13 = scmp.ne.s32.totalorder %s1491_s17, %s1065_s10  ;;  %p1569_p8 = scmp.ne.s32.totalorder %s1562_s28, 0 }
  0x57   : > { %v297_v8 = vpack.c.bf16 %v1338_v5, %v1334_v3  ;;  %v300_v9 = vpack.c.bf16 %v1342_v7, %v1340_v6  ;;  %v1348_v10 = vld [vmem:[%s281_s12 + $0x20] sm:$0xff]  ;;  %v1350_v11 = vld [vmem:[%s281_s12 + $0x30] sm:$0xff]  ;;  %v906_v30 = vld [vmem:[%s1554_s4 + $0x38] sm:$0xff]  ;;  %s1158_s26 = smov [#allocation7]  }
  0x58   : > { %342 = vmatprep.subr.bf16.mxu0 %v298_v4  ;;  %v299_v12 = vpack.c.bf16 %v1350_v11, %v1348_v10  ;;  %v1003_v63 = vld [vmem:[#allocation5] sm:$0xff]   ;;  %v1004_v4 = vld [vmem:[#allocation5 + $0x8] sm:$0xff]   ;;  %p1067_p10 = pnand %p1066_p13, %p1569_p8  ;;  %s1069_s14 = sshll.u32 %s1158_s26, 4  ;;  %s1070_s14 = int_to_ptr.vmem [resolvable:$false] %s1069_s14 }
  0x59   : > { %343 = vmatpush1.bf16.msra.mxu0 %v297_v8  ;;  %s1071_s7 = scalar_lea.vmem %s1070_s14, 2048  ;;  %p1072_p2 = scmp.lt.s32.totalorder %s1491_s17, %s1070_s14 }
  0x5a   : > { %344 = vmatprep.subr.bf16.mxu0 %v300_v9  ;;  %417 = vperm.xlu0 %999, %v411_v18   ;;  %p1068_p11 = pneg %p1067_p10  ;;  %p1073_p3 = scmp.lt.s32.totalorder %s1071_s7, %s1065_s10 }
  0x5b   : > { %422 = vperm.xlu1 %1000, %v412_v19  }
  0x5c   : > { %p1074_p5 = por %p1073_p3, %p1072_p2 }
  0x5d   : > { %345 = vmatpush1.bf16.msra.mxu0 %v299_v12 }
  0x5e   : > { %427 = vperm.xlu0 %999, %v413_v20   ;;  %p1075_p6 = pnand %p1074_p5, %p1068_p11 }
  0x5f   : > { %432 = vperm.xlu1 %1000, %v414_v22  }
  0x60   : > { %889 = vmatmul.mubr.msk.bf16.vlgmr.msra.gmra.mrb[0].mxu0 %vm335_vm0, %v1001_v16 }
  0x61   : > { %384 = vmatprep.mubr.bf16.mxu0 %v1157_v0 }
  0x62   : > { %536 = vperm.xlu0 %999, %v895_v23  }
  0x63   : > { %541 = vperm.xlu1 %1000, %v896_v24  }
  0x66   : > { %546 = vperm.xlu0 %999, %v897_v25  }
  0x67   : > { %551 = vperm.xlu1 %1000, %v898_v26  }
  0x68   : > { %890 = vmatmul.mubr.msk.bf16.gmra.mrb[4].mxu0 %vm335_vm0, %v1002_v21 }
  0x69   : > { %602 = vmatprep.mubr.bf16.mxu0 %v1157_v0 }
  0x6a   : > { %647 = vperm.xlu0 %999, %v903_v27  }
  0x6b   : > { %652 = vperm.xlu1 %1000, %v904_v28  }
  0x6e   : > { %657 = vperm.xlu0 %999, %v905_v29  }
  0x6f   : > { %662 = vperm.xlu1 %1000, %v906_v30  }
  0xd1   : > { %v308_v31 = vpop.permute.xlu0 %307  ;;  %v318_v40 = vpop.permute.xlu1 %317 }
  0xd5   : > { %v313_v35 = vpop.permute.xlu0 %312  ;;  %v323_v51 = vpop.permute.xlu1 %322 }
  0xd9   : > { %v418_v8 = vpop.permute.xlu0 %417 }
  0xda   : > { %v423_v14 = vpop.permute.xlu1 %422 }
  0xdd   : > { %v428_v25 = vpop.permute.xlu0 %427 }
 0x133   : > { %v376_v32 = vpop.f32.mrb[0].mxu0 }
 0x134   : > { %v377_v33 = vadd.f32 %v376_v32, %v308_v31  ;;  %v378_v34 = vpop.f32.mrb[1].mxu0 }
 0x135   : > { %v379_v36 = vadd.f32 %v378_v34, %v308_v31  ;;  %v380_v37 = vpop.f32.mrb[2].mxu0 }
 0x136   : > { %v381_v38 = vadd.f32 %v380_v37, %v313_v35  ;;  %v382_v39 = vpop.f32.mrb[3].mxu0  ;;  %v395_v42 = vmax.f32 %v377_v33, 0.0 }
 0x137   : > { %v383_v41 = vadd.f32 %v382_v39, %v313_v35  ;;  %v396_v44 = vmax.f32 %v379_v36, 0.0 }
 0x138   : > { %v397_v43 = vmax.f32 %v381_v38, 0.0 }
 0x139   : > { %v398_v45 = vmax.f32 %v383_v41, 0.0 }
 0x13a   : > { %v407_v46 = vpack.c.bf16 %v397_v43, %v395_v42  ;;  %v1006_v43 = vld [vmem:[#allocation2 + $0x18] sm:$0xff]  }
 0x13b   : > { %v386_v47 = vpop.f32.mrb[4].mxu0  ;;  %v408_v48 = vpack.c.bf16 %v398_v45, %v396_v44  ;;  %v537_v44 = vpop.permute.xlu0 %536 }
 0x13c   : > { %v387_v49 = vadd.f32 %v386_v47, %v318_v40  ;;  %v388_v50 = vpop.f32.mrb[5].mxu0 }
 0x13d   : > { %v389_v52 = vadd.f32 %v388_v50, %v318_v40  ;;  %v390_v53 = vpop.f32.mrb[6].mxu0  ;;  %451 = vmatprep.subr.bf16.mxu1 %v408_v48 }
 0x13e   : > { %v391_v54 = vadd.f32 %v390_v53, %v323_v51  ;;  %v392_v55 = vpop.f32.mrb[7].mxu0  ;;  %452 = vmatpush1.bf16.msra.mxu1 %v407_v46  ;;  %v399_v57 = vmax.f32 %v387_v49, 0.0 }
 0x13f   : > { %v393_v56 = vadd.f32 %v392_v55, %v323_v51  ;;  %v400_v59 = vmax.f32 %v389_v52, 0.0 }
 0x140   : > { %v401_v58 = vmax.f32 %v391_v54, 0.0 }
 0x141   : > { %v402_v60 = vmax.f32 %v393_v56, 0.0 }
 0x142   : > { %v409_v61 = vpack.c.bf16 %v401_v58, %v399_v57 }
 0x143   : > { %v410_v62 = vpack.c.bf16 %v402_v60, %v400_v59  ;;  %v547_v59 = vpop.permute.xlu0 %546 }
 0x145   : > { %453 = vmatprep.subr.bf16.mxu1 %v410_v62 }
 0x146   : > { %454 = vmatpush1.bf16.msra.mxu1 %v409_v61 }
 0x149   : > { %893 = vmatmul.mubr.msk.bf16.vlgmr.msra.gmra.mrb[0].mxu1 %vm335_vm0, %v1003_v63 }
 0x14a   : > { %493 = vmatprep.mubr.bf16.mxu1 %v1157_v0 }
 0x151   : > { %894 = vmatmul.mubr.msk.bf16.gmra.mrb[4].mxu1 %vm335_vm0, %v1004_v4 }
 0x152   : > { %713 = vmatprep.mubr.bf16.mxu1 %v1157_v0 }
 0x21c   : > { %v485_v9 = vpop.f32.mrb[0].mxu1 }
 0x21d   : > { %v486_v12 = vadd.f32 %v485_v9, %v418_v8  ;;  %v487_v13 = vpop.f32.mrb[1].mxu1 }
 0x21e   : > { %v488_v15 = vadd.f32 %v487_v13, %v418_v8  ;;  %v489_v16 = vpop.f32.mrb[2].mxu1 }
 0x21f   : > { %v490_v17 = vadd.f32 %v489_v16, %v423_v14  ;;  %v491_v18 = vpop.f32.mrb[3].mxu1  ;;  %v1414_v21 = vadd.f32 %v486_v12, %v1334_v3  ;;  %v433_v3 = vpop.permute.xlu1 %432 }
 0x220   : > { %v1411_v19 = vadd.f32 %v488_v15, %v1330_v1  ;;  %v492_v20 = vadd.f32 %v491_v18, %v423_v14 }
 0x221   : > { %v1417_v22 = vadd.f32 %v490_v17, %v1338_v5  ;;  %v512_v1 = vmax.f32 %v1414_v21, 0.0 }
 0x222   : > { %v1420_v23 = vadd.f32 %v492_v20, %v1332_v2  ;;  %v513_v26 = vmax.f32 %v1411_v19, 0.0 }
 0x223   : > { %v514_v24 = vmax.f32 %v1417_v22, 0.0  ;;  %v542_v48 = vpop.permute.xlu1 %541 }
 0x224   : > { %v515_v27 = vmax.f32 %v1420_v23, 0.0  ;;  %v495_v28 = vpop.f32.mrb[4].mxu1 }
 0x225   : > { %v496_v29 = vadd.f32 %v495_v28, %v428_v25  ;;  %v497_v30 = vpop.f32.mrb[5].mxu1  ;;  %v525_v5 = vpack.c.bf16 %v514_v24, %v512_v1  ;;  %v1007_v28 = vld [vmem:[#allocation5 + $0x10] sm:$0xff]  }
 0x226   : > { %v498_v31 = vadd.f32 %v497_v30, %v428_v25  ;;  %v499_v32 = vpop.f32.mrb[6].mxu1  ;;  %v526_v2 = vpack.c.bf16 %v515_v27, %v513_v26  ;;  %v648_v30 = vpop.permute.xlu0 %647 }
 0x227   : > { %v500_v33 = vadd.f32 %v499_v32, %v433_v3  ;;  %v501_v34 = vpop.f32.mrb[7].mxu1  ;;  %v1438_v37 = vadd.f32 %v496_v29, %v1348_v10  ;;  %v552_v4 = vpop.permute.xlu1 %551  ;;  %v1008_v29 = vld [vmem:[#allocation5 + $0x18] sm:$0xff]  }
 0x228   : > { %v1435_v35 = vadd.f32 %v498_v31, %v1340_v6  ;;  %v502_v36 = vadd.f32 %v501_v34, %v433_v3  ;;  %570 = vmatprep.subr.bf16.mxu0 %v526_v2 }
 0x229   : > { %v1441_v38 = vadd.f32 %v500_v33, %v1350_v11  ;;  %571 = vmatpush1.bf16.msra.mxu0 %v525_v5  ;;  %v516_v6 = vmax.f32 %v1438_v37, 0.0 }
 0x22a   : > { %v1444_v39 = vadd.f32 %v502_v36, %v1342_v7  ;;  %v517_v41 = vmax.f32 %v1435_v35, 0.0  ;;  %v1005_v7 = vld [vmem:[#allocation2 + $0x10] sm:$0xff]   ;;  %v658_v19 = vpop.permute.xlu0 %657 }
 0x22b   : > { %v518_v40 = vmax.f32 %v1441_v38, 0.0  ;;  %v653_v2 = vpop.permute.xlu1 %652 }
 0x22c   : > { %v519_v42 = vmax.f32 %v1444_v39, 0.0 }
 0x22d   : > { %v527_v11 = vpack.c.bf16 %v518_v40, %v516_v6 }
 0x22e   : > { %v528_v10 = vpack.c.bf16 %v519_v42, %v517_v41 }
 0x230   : > { %572 = vmatprep.subr.bf16.mxu0 %v528_v10 }
 0x231   : > { %573 = vmatpush1.bf16.msra.mxu0 %v527_v11 }
 0x234   : > { %901 = vmatmul.mubr.msk.bf16.vlgmr.msra.gmra.mrb[8].mxu0 %vm335_vm0, %v1005_v7 }
 0x235   : > { %612 = vmatprep.mubr.bf16.mxu0 %v1157_v0 }
 0x23c   : > { %902 = vmatmul.mubr.msk.bf16.gmra.mrb[12].mxu0 %vm335_vm0, %v1006_v43 }
 0x307   : > { %v604_v45 = vpop.f32.mrb[8].mxu0 }
 0x308   : > { %v605_v46 = vadd.f32 %v604_v45, %v537_v44  ;;  %v606_v47 = vpop.f32.mrb[9].mxu0 }
 0x309   : > { %v607_v49 = vadd.f32 %v606_v47, %v537_v44  ;;  %v608_v50 = vpop.f32.mrb[10].mxu0 }
 0x30a   : > { %v609_v51 = vadd.f32 %v608_v50, %v542_v48  ;;  %v610_v52 = vpop.f32.mrb[11].mxu0  ;;  %v623_v54 = vmax.f32 %v605_v46, 0.0  ;;  %v663_v46 = vpop.permute.xlu1 %662 }
 0x30b   : > { %v611_v53 = vadd.f32 %v610_v52, %v542_v48  ;;  %v624_v56 = vmax.f32 %v607_v49, 0.0 }
 0x30c   : > { %v625_v55 = vmax.f32 %v609_v51, 0.0 }
 0x30d   : > { %v626_v57 = vmax.f32 %v611_v53, 0.0 }
 0x30e   : > { %v636_v58 = vpack.c.bf16 %v625_v55, %v623_v54 }
 0x30f   : > { %v637_v60 = vpack.c.bf16 %v626_v57, %v624_v56  ;;  %v614_v61 = vpop.f32.mrb[12].mxu0 }
 0x310   : > { %v615_v62 = vadd.f32 %v614_v61, %v547_v59  ;;  %v616_v63 = vpop.f32.mrb[13].mxu0 }
 0x311   : > { %v617_v8 = vadd.f32 %v616_v63, %v547_v59  ;;  %v618_v9 = vpop.f32.mrb[14].mxu0  ;;  %681 = vmatprep.subr.bf16.mxu1 %v637_v60 }
 0x312   : > { %v619_v12 = vadd.f32 %v618_v9, %v552_v4  ;;  %v620_v13 = vpop.f32.mrb[15].mxu0  ;;  %682 = vmatpush1.bf16.msra.mxu1 %v636_v58  ;;  %v627_v15 = vmax.f32 %v615_v62, 0.0 }
 0x313   : > { %v621_v14 = vadd.f32 %v620_v13, %v552_v4  ;;  %v628_v17 = vmax.f32 %v617_v8, 0.0 }
 0x314   : > { %v629_v16 = vmax.f32 %v619_v12, 0.0 }
 0x315   : > { %v630_v18 = vmax.f32 %v621_v14, 0.0 }
 0x316   : > { %v638_v20 = vpack.c.bf16 %v629_v16, %v627_v15 }
 0x317   : > { %v639_v25 = vpack.c.bf16 %v630_v18, %v628_v17 }
 0x319   : > { %683 = vmatprep.subr.bf16.mxu1 %v639_v25 }
 0x31a   : > { %684 = vmatpush1.bf16.msra.mxu1 %v638_v20 }
 0x31d   : > { %909 = vmatmul.mubr.msk.bf16.vlgmr.msra.gmra.mrb[8].mxu1 %vm335_vm0, %v1007_v28 }
 0x31e   : > { %723 = vmatprep.mubr.bf16.mxu1 %v1157_v0 }
 0x325   : > { %910 = vmatmul.mubr.msk.bf16.gmra.mrb[12].mxu1 %vm335_vm0, %v1008_v29 }
 0x3f0   : > { %v715_v3 = vpop.f32.mrb[8].mxu1 }
 0x3f1   : > { %v716_v31 = vadd.f32 %v715_v3, %v648_v30  ;;  %v717_v32 = vpop.f32.mrb[9].mxu1 }
 0x3f2   : > { %v718_v5 = vadd.f32 %v717_v32, %v648_v30  ;;  %v719_v33 = vpop.f32.mrb[10].mxu1 }
 0x3f3   : > { %v734_v34 = vadd.f32 %v716_v31, %v512_v1  ;;  %v720_v36 = vadd.f32 %v719_v33, %v653_v2  ;;  %v721_v10 = vpop.f32.mrb[11].mxu1 }
 0x3f4   : > { %v735_v0 = vadd.f32 %v718_v5, %v513_v26  ;;  %v722_v11 = vadd.f32 %v721_v10, %v653_v2 }
 0x3f5   : > { %v742_v7 = vmax.f32 %v734_v34, 0.0  ;;  %v736_v43 = vadd.f32 %v720_v36, %v514_v24 }
 0x3f6   : > { %v743_v44 = vmax.f32 %v735_v0, 0.0  ;;  %v737_v45 = vadd.f32 %v722_v11, %v515_v27 }
 0x3f7   : > { %750 = vst [vmem:[%s1475_s16] sm:$0xff] %v742_v7  ;;  %v744_v21 = vmax.f32 %v736_v43, 0.0 }
 0x3f8   : > { %751 = vst [vmem:[%s1475_s16 + $0x8] sm:$0xff] %v743_v44  ;;  %v745_v26 = vmax.f32 %v737_v45, 0.0  ;;  %v725_v1 = vpop.f32.mrb[12].mxu1 }
 0x3f9   : > { %752 = vst [vmem:[%s1475_s16 + $0x10] sm:$0xff] %v744_v21  ;;  %v726_v22 = vadd.f32 %v725_v1, %v658_v19  ;;  %v727_v24 = vpop.f32.mrb[13].mxu1 }
 0x3fa   : > { %753 = vst [vmem:[%s1475_s16 + $0x18] sm:$0xff] %v745_v26  ;;  %v728_v23 = vadd.f32 %v727_v24, %v658_v19  ;;  %v729_v27 = vpop.f32.mrb[14].mxu1 }
 0x3fb   : > { %v738_v47 = vadd.f32 %v726_v22, %v516_v6  ;;  %v730_v48 = vadd.f32 %v729_v27, %v663_v46  ;;  %v731_v49 = vpop.f32.mrb[15].mxu1 }
 0x3fc   : > { %v739_v50 = vadd.f32 %v728_v23, %v517_v41  ;;  %v732_v51 = vadd.f32 %v731_v49, %v663_v46 }
 0x3fd   : > { %v746_v52 = vmax.f32 %v738_v47, 0.0  ;;  %v740_v53 = vadd.f32 %v730_v48, %v518_v40 }
 0x3fe   : > { %v747_v54 = vmax.f32 %v739_v50, 0.0  ;;  %v741_v37 = vadd.f32 %v732_v51, %v519_v42 }
 0x3ff   : > { %754 = vst [vmem:[%s1475_s16 + $0x20] sm:$0xff] %v746_v52  ;;  %v748_v35 = vmax.f32 %v740_v53, 0.0 }
 0x400   : > { %755 = vst [vmem:[%s1475_s16 + $0x28] sm:$0xff] %v747_v54  ;;  %v749_v41 = vmax.f32 %v741_v37, 0.0 }
 0x401   : > { %756 = vst [vmem:[%s1475_s16 + $0x30] sm:$0xff] %v748_v35 }
 0x402   : > { %757 = vst [vmem:[%s1475_s16 + $0x38] sm:$0xff] %v749_v41 }
 0x403   : > { %1078 = shalt.err (!%p1075_p6)
}
 0x404   : > { %s1079_s11 = scalar_lea.hbm %s1497_s21, 1024  ;;  %s1083_s12 = scalar_lea.hbm %s1555_s5, 2048 }
 0x405   : > { %p1080_p7 = scmp.ne.s32.totalorder %s1497_s21, %s1079_s11  ;;  %p1084_p0 = scmp.lt.u32.totalorder %s1497_s21, %s1555_s5 }
 0x406   : > { %p1085_p4 = scmp.lt.u32.totalorder %s1083_s12, %s1079_s11  ;;  %p1087_p13 = scmp.lt.u32.totalorder %s1079_s11, %s1497_s21 }
 0x407   : > { %p1081_p9 = pnand %p1080_p7, %p1569_p8 }
 0x408   : > { %p1086_p1 = por %p1085_p4, %p1084_p0 }
 0x409   : > { %p1082_p12 = pneg %p1081_p9 }
 0x40a   : > { %p1088_p10 = por %p1087_p13, %p1086_p1 }
 0x40c   : > { %p1089_p11 = pnand %p1088_p10, %p1082_p12 }
 0x40e   : > { %1092 = shalt.err (!%p1089_p11)
}
 0x40f   : > { %s1159_s16 = smov 256   ;;  %s1160_s24 = smov 16  }
 0x410   : > { %926 = dma.vmem_to_hbm [thread:$0]  (%p1569_p8), %s1491_s17, 1024, %s1497_s21, %s1504_s29, %s1159_s16, %s1159_s16, %s1160_s24  }
 0x411 PF: > { %p943_p2 = scmp.ge.s32.totalorder %s1151_s23, 2  ;;  %s789_s25 = sand.u32 1, %s1131_s18  }
 0x412   : > { %p1570_p3 = scmp.ne.s32.totalorder %s1563_s30, 0  ;;  %s790_s27 = scalar_lea.sflag [#allocation4], %s789_s25 }
 0x414   : > { %p936_p5 = pnand %p943_p2, %p1570_p3 }
 0x416   : > { %1126 = dma.done.wait (!%p936_p5), %s790_s27, 1024  }
 0x417   : > { %1128 = vsyncadd (!%p936_p5), %s790_s27, 4294966272  ;;  %s20_s23 = sadd.s32 1, %s1151_s23   ;;  %s1571_s28 = sld [smem:[#allocation11_spill]] }
 0x418   : > { %p17_p6 = scmp.ge.s32.totalorder %s20_s23, 4   ;;  %s1572_s18 = smov %s1135_s19 }
 0x419   : > { %s1573_s19 = smov %s1139_s20  ;;  %s1574_s20 = smov %s1244_s6 }
 0x41a   : > { %s1575_s21 = smov %s1147_s22  ;;  %19 = sbr.rel (!%p17_p6) target bundleno = 6 (0x6), region = 88 }
 0x41d   : > { %s1576_s22 = smov %s1571_s28 }
 0x421   :  { %795 = vsyncpa [#allocation3], 1 }
 0x422   :  { %797 = vsyncpa [#allocation3 + $0x1], 1 }
 0x423   :  { %798 = vsyncpa [#allocation6], 1 }
 0x424   :  { %799 = vsyncpa [#allocation4], 1 }
 0x425   :  { %801 = vsyncpa [#allocation4 + $0x1], 1 }

</bundles_post_ra>
